<compile_context>
chip_gen: v7x
topology: tpu7x:2x2x1
jax: 0.10.0
libtpu: 0.0.40
codegen_flags: <defaults>
</compile_context>

<pallas_src>
import functools

import jax
import jax.numpy as jnp
import numpy as np
from jax.experimental import pallas as pl
from jax.experimental.pallas import tpu as pltpu


def _cs_se_kernel(x_ref, w1_ref, b1_ref, w2_ref, b2_ref, ws_ref, bs_ref, o_ref,
                  *, inv_hw):
    # x_ref block: (bt, C, HWp) in the I/O dtype; all math in f32.
    x = x_ref[...].astype(jnp.float32)                                   # (bt, C, HWp)

    # ---- channel squeeze-excitation (squeeze spatially, excite channels) ----
    # Zero padding along HWp does not change the sum; divide by the true H*W.
    mean_bc = jnp.sum(x, axis=-1) * inv_hw                               # (bt, C)

    # 1x1 conv C -> Cr per batch element: tiny broadcast-multiply + lane reduce.
    # Kept off the MXU on purpose (degenerate matmul).
    h = jnp.sum(mean_bc[:, None, :] * w1_ref[...][None, :, :], axis=-1)  # (bt, Cr)
    h = jnp.maximum(h + b1_ref[...], 0.0)                                # ReLU

    # 1x1 conv Cr -> C + sigmoid -> per-(batch, channel) gate.
    z = jnp.sum(h[:, None, :] * w2_ref[...][None, :, :], axis=-1)        # (bt, C)
    gate_c = jax.nn.sigmoid(z + b2_ref[...])                             # (bt, C)

    channel_out = x * gate_c[:, :, None]                                 # (bt, C, HWp)

    # ---- spatial squeeze-excitation (squeeze channels, excite spatially) ----
    # 1x1 conv C -> 1 at every spatial position: sum_c ws[c] * x[:, c, :] + bs.
    pre = jnp.sum(x * ws_ref[...][None, :, :], axis=1, keepdims=True)    # (bt, 1, HWp)
    gate_s = jax.nn.sigmoid(pre + bs_ref[0])                             # (bt, 1, HWp)

    spatial_out = x * gate_s                                             # (bt, C, HWp)

    o_ref[...] = jnp.maximum(channel_out, spatial_out).astype(o_ref.dtype)


def _pick_batch_tile(batch, bytes_per_batch, target_bytes=1 << 20):
    """Largest divisor of `batch` giving ~<=1 MiB blocks, keeping the grid >= 2."""
    divisors = [d for d in range(1, batch + 1) if batch % d == 0]
    fit = [d for d in divisors if d * bytes_per_batch <= target_bytes] or [1]
    if batch >= 2:
        multi = [d for d in fit if batch // d >= 2]
        if multi:
            fit = multi
    return max(fit)


def channel_spatial_se(x, w1, b1, w2, b2, ws, bs):
    """x: (B, C, H, W).  Params are the squeezed 1x1-conv weights/biases."""
    B, C, H, W = x.shape
    HW = H * W
    Cr = w1.shape[0]
    itemsize = jnp.dtype(x.dtype).itemsize

    # Lane-dense layout: flatten spatial dims, pad to a multiple of 128.
    HWp = ((HW + 127) // 128) * 128
    x_flat = x.reshape(B, C, HW)
    if HWp != HW:
        x_flat = jnp.pad(x_flat, ((0, 0), (0, 0), (0, HWp - HW)))

    # Batch tile: ~1 MiB blocks, grid kept >= 2 so both v7x TensorCores get work.
    bt = _pick_batch_tile(B, C * HWp * itemsize)
    grid = (B // bt,)
    block_bytes = bt * C * HWp * itemsize
    # TODO(synk): for very large C*H*W (a single (1, C, HWp) slab of many MiB)
    # add an HW-tiled two-pass variant (mean pass + gate pass) instead.

    # Pre-shape the tiny parameters so the kernel body needs no transposes.
    w1f = w1.astype(jnp.float32)                   # (Cr, C)
    w2f = w2.astype(jnp.float32)                   # (C, Cr)
    b1r = b1.reshape(1, Cr).astype(jnp.float32)    # row -> broadcasts over batch
    b2r = b2.reshape(1, C).astype(jnp.float32)
    wsc = ws.reshape(C, 1).astype(jnp.float32)     # column -> broadcasts over HW
    bss = bs.reshape(1).astype(jnp.float32)        # true scalar -> SMEM

    kernel = functools.partial(_cs_se_kernel, inv_hw=np.float32(1.0 / HW))

    out = pl.pallas_call(
        kernel,
        out_shape=jax.ShapeDtypeStruct((B, C, HWp), x.dtype),
        grid_spec=pltpu.PrefetchScalarGridSpec(
            num_scalar_prefetch=0,
            grid=grid,
            in_specs=[
                pl.BlockSpec((bt, C, HWp), lambda b: (b, 0, 0)),    # x slab (bt batches)
                pl.BlockSpec((Cr, C), lambda b: (0, 0)),            # conv1 weight
                pl.BlockSpec((1, Cr), lambda b: (0, 0)),            # conv1 bias row
                pl.BlockSpec((C, Cr), lambda b: (0, 0)),            # conv2 weight
                pl.BlockSpec((1, C), lambda b: (0, 0)),             # conv2 bias row
                pl.BlockSpec((C, 1), lambda b: (0, 0)),             # spatial conv weight
                pl.BlockSpec(memory_space=pltpu.MemorySpace.SMEM),  # spatial conv bias
            ],
            out_specs=pl.BlockSpec((bt, C, HWp), lambda b: (b, 0, 0)),
        ),
        compiler_params=pltpu.CompilerParams(
            dimension_semantics=("parallel",),
            vmem_limit_bytes=int(min(max(12 * block_bytes, 8 << 20), 32 << 20)),
        ),
    )(x_flat, w1f, b1r, w2f, b2r, wsc, bss)

    if HWp != HW:
        out = out[:, :, :HW]
    return out.reshape(B, C, H, W)


def _reference(x, w1, b1, w2, b2, ws, bs):
    """Plain-JAX reference mirroring the PyTorch module."""
    # channel SE
    m = jnp.mean(x, axis=(2, 3))                              # (B, C)
    h = jax.nn.relu(m @ w1.T + b1)                            # (B, Cr)
    gc = jax.nn.sigmoid(h @ w2.T + b2)                        # (B, C)
    channel_out = x * gc[:, :, None, None]
    # spatial SE
    pre = jnp.einsum("bchw,c->bhw", x, ws) + bs[0]            # (B, H, W)
    gs = jax.nn.sigmoid(pre)[:, None, :, :]
    spatial_out = x * gs
    return jnp.maximum(channel_out, spatial_out)


if __name__ == "__main__":
    # Small shapes consistent with the module: B=2, C=4, H=W=16, Cr=2
    B, C, H, W = 2, 4, 16, 16
    Cr = 2  # num_channels_reduced passed explicitly

    key = jax.random.PRNGKey(0)
    k = jax.random.split(key, 7)
    x = jax.random.normal(k[0], (B, C, H, W), dtype=jnp.float32)

    # Parameters matching the PyTorch 1x1 convs (kernel dims squeezed):
    #   conv1: (Cr, C) + (Cr,)   conv2: (C, Cr) + (C,)   spatial: (C,) + (1,)
    w1 = 0.5 * jax.random.normal(k[1], (Cr, C), dtype=jnp.float32)
    b1 = 0.1 * jax.random.normal(k[2], (Cr,), dtype=jnp.float32)
    w2 = 0.5 * jax.random.normal(k[3], (C, Cr), dtype=jnp.float32)
    b2 = 0.1 * jax.random.normal(k[4], (C,), dtype=jnp.float32)
    ws = 0.5 * jax.random.normal(k[5], (C,), dtype=jnp.float32)
    bs = 0.1 * jax.random.normal(k[6], (1,), dtype=jnp.float32)

    out = channel_spatial_se(x, w1, b1, w2, b2, ws, bs)
    out = jax.block_until_ready(out)

    ref = jax.block_until_ready(_reference(x, w1, b1, w2, b2, ws, bs))
    np.testing.assert_allclose(np.asarray(out), np.asarray(ref), rtol=1e-5, atol=1e-5)

    print("KERNEL_OK")
</pallas_src>

<mosaic_0001>
module attributes {stable_mosaic.version = 11 : i64} {
  func.func @_cs_se_kernel(%arg0: i32, %arg1: memref<1x4x256xf32, #tpu.memory_space<vmem>>, %arg2: memref<2x4xf32, #tpu.memory_space<vmem>>, %arg3: memref<1x2xf32, #tpu.memory_space<vmem>>, %arg4: memref<4x2xf32, #tpu.memory_space<vmem>>, %arg5: memref<1x4xf32, #tpu.memory_space<vmem>>, %arg6: memref<4x1xf32, #tpu.memory_space<vmem>>, %arg7: memref<1xf32, #tpu.memory_space<smem>>, %arg8: memref<1x4x256xf32, #tpu.memory_space<vmem>>) attributes {dimension_semantics = [#tpu.dimension_semantics<parallel>], iteration_bounds = array<i64: 2>, scalar_prefetch = 0 : i64, scratch_operands = 0 : i64, tpu.core_type = #tpu.core_type<tc>, window_params = [{transform_indices = @transform_0, window_bounds = array<i64: 1, 4, 256>}, {pipeline_mode = #tpu.pipeline_mode<synchronous>, transform_indices = @transform_1, window_bounds = array<i64: 2, 4>}, {pipeline_mode = #tpu.pipeline_mode<synchronous>, transform_indices = @transform_2, window_bounds = array<i64: 1, 2>}, {pipeline_mode = #tpu.pipeline_mode<synchronous>, transform_indices = @transform_3, window_bounds = array<i64: 4, 2>}, {pipeline_mode = #tpu.pipeline_mode<synchronous>, transform_indices = @transform_4, window_bounds = array<i64: 1, 4>}, {pipeline_mode = #tpu.pipeline_mode<synchronous>, transform_indices = @transform_5, window_bounds = array<i64: 4, 1>}, {transform_indices = @transform_6, window_bounds = array<i64: 1>}, {transform_indices = @transform_7, window_bounds = array<i64: 1, 4, 256>}]} {
    %c0 = arith.constant 0 : index
    %c0_0 = arith.constant 0 : index
    %c0_1 = arith.constant 0 : index
    %0 = vector.load %arg1[%c0, %c0_0, %c0_1] : memref<1x4x256xf32, #tpu.memory_space<vmem>>, vector<1x4x256xf32>
    %cst = arith.constant dense<0.000000e+00> : vector<1x4xf32>
    %1 = vector.multi_reduction <add>, %0, %cst [2] : vector<1x4x256xf32> to vector<1x4xf32>
    %cst_2 = arith.constant 3.906250e-03 : f32
    %2 = vector.broadcast %cst_2 : f32 to vector<1x4xf32>
    %3 = arith.mulf %1, %2 : vector<1x4xf32>
    %4 = vector.shape_cast %3 : vector<1x4xf32> to vector<1x1x4xf32>
    %c0_3 = arith.constant 0 : index
    %c0_4 = arith.constant 0 : index
    %5 = vector.load %arg2[%c0_3, %c0_4] : memref<2x4xf32, #tpu.memory_space<vmem>>, vector<2x4xf32>
    %6 = vector.shape_cast %5 : vector<2x4xf32> to vector<1x2x4xf32>
    %7 = vector.broadcast %4 : vector<1x1x4xf32> to vector<1x2x4xf32>
    %8 = arith.mulf %7, %6 : vector<1x2x4xf32>
    %cst_5 = arith.constant dense<0.000000e+00> : vector<1x2xf32>
    %9 = vector.multi_reduction <add>, %8, %cst_5 [2] : vector<1x2x4xf32> to vector<1x2xf32>
    %c0_6 = arith.constant 0 : index
    %c0_7 = arith.constant 0 : index
    %10 = vector.load %arg3[%c0_6, %c0_7] : memref<1x2xf32, #tpu.memory_space<vmem>>, vector<1x2xf32>
    %11 = arith.addf %9, %10 : vector<1x2xf32>
    %cst_8 = arith.constant 0.000000e+00 : f32
    %12 = vector.broadcast %cst_8 : f32 to vector<1x2xf32>
    %13 = arith.maximumf %11, %12 : vector<1x2xf32>
    %14 = vector.shape_cast %13 : vector<1x2xf32> to vector<1x1x2xf32>
    %c0_9 = arith.constant 0 : index
    %c0_10 = arith.constant 0 : index
    %15 = vector.load %arg4[%c0_9, %c0_10] : memref<4x2xf32, #tpu.memory_space<vmem>>, vector<4x2xf32>
    %16 = vector.shape_cast %15 : vector<4x2xf32> to vector<1x4x2xf32>
    %17 = vector.broadcast %14 : vector<1x1x2xf32> to vector<1x4x2xf32>
    %18 = arith.mulf %17, %16 : vector<1x4x2xf32>
    %cst_11 = arith.constant dense<0.000000e+00> : vector<1x4xf32>
    %19 = vector.multi_reduction <add>, %18, %cst_11 [2] : vector<1x4x2xf32> to vector<1x4xf32>
    %c0_12 = arith.constant 0 : index
    %c0_13 = arith.constant 0 : index
    %20 = vector.load %arg5[%c0_12, %c0_13] : memref<1x4xf32, #tpu.memory_space<vmem>>, vector<1x4xf32>
    %21 = arith.addf %19, %20 : vector<1x4xf32>
    %22 = arith.negf %21 : vector<1x4xf32>
    %23 = math.exp %22 : vector<1x4xf32>
    %cst_14 = arith.constant 1.000000e+00 : f32
    %24 = vector.broadcast %cst_14 : f32 to vector<1x4xf32>
    %25 = arith.addf %24, %23 : vector<1x4xf32>
    %26 = arith.divf %24, %25 : vector<1x4xf32>
    %27 = vector.shape_cast %26 : vector<1x4xf32> to vector<1x4x1xf32>
    %28 = vector.broadcast %27 : vector<1x4x1xf32> to vector<1x4x256xf32>
    %29 = arith.mulf %0, %28 : vector<1x4x256xf32>
    %c0_15 = arith.constant 0 : index
    %c0_16 = arith.constant 0 : index
    %30 = vector.load %arg6[%c0_15, %c0_16] : memref<4x1xf32, #tpu.memory_space<vmem>>, vector<4x1xf32>
    %31 = vector.shape_cast %30 : vector<4x1xf32> to vector<1x4x1xf32>
    %32 = vector.broadcast %31 : vector<1x4x1xf32> to vector<1x4x256xf32>
    %33 = arith.mulf %0, %32 : vector<1x4x256xf32>
    %cst_17 = arith.constant dense<0.000000e+00> : vector<1x256xf32>
    %34 = vector.multi_reduction <add>, %33, %cst_17 [1] : vector<1x4x256xf32> to vector<1x256xf32>
    %35 = vector.shape_cast %34 : vector<1x256xf32> to vector<1x1x256xf32>
    %c0_18 = arith.constant 0 : index
    %36 = memref.load %arg7[%c0_18] : memref<1xf32, #tpu.memory_space<smem>>
    %37 = vector.broadcast %36 : f32 to vector<1x1x256xf32>
    %38 = arith.addf %35, %37 : vector<1x1x256xf32>
    %39 = arith.negf %38 : vector<1x1x256xf32>
    %40 = math.exp %39 : vector<1x1x256xf32>
    %cst_19 = arith.constant 1.000000e+00 : f32
    %41 = vector.broadcast %cst_19 : f32 to vector<1x1x256xf32>
    %42 = arith.addf %41, %40 : vector<1x1x256xf32>
    %43 = arith.divf %41, %42 : vector<1x1x256xf32>
    %44 = vector.broadcast %43 : vector<1x1x256xf32> to vector<1x4x256xf32>
    %45 = arith.mulf %0, %44 : vector<1x4x256xf32>
    %46 = arith.maximumf %29, %45 : vector<1x4x256xf32>
    %c0_20 = arith.constant 0 : index
    %c0_21 = arith.constant 0 : index
    %c0_22 = arith.constant 0 : index
    %47 = vector.load %arg8[%c0_20, %c0_21, %c0_22] : memref<1x4x256xf32, #tpu.memory_space<vmem>>, vector<1x4x256xf32>
    tpu.vector_store %arg8[%c0_20, %c0_21, %c0_22], %46 {strides = array<i32>} : memref<1x4x256xf32, #tpu.memory_space<vmem>>, vector<1x4x256xf32>,
    return
  }
  func.func @transform_0(%arg0: i32) -> (i32, i32, i32) {
    %c0_i32 = arith.constant 0 : i32
    %c0_i32_0 = arith.constant 0 : i32
    %c0_i32_1 = arith.constant 0 : i32
    return %arg0, %c0_i32, %c0_i32_0 : i32, i32, i32
  }
  func.func @transform_1(%arg0: i32) -> (i32, i32) {
    %c0_i32 = arith.constant 0 : i32
    %c0_i32_0 = arith.constant 0 : i32
    %c0_i32_1 = arith.constant 0 : i32
    return %c0_i32, %c0_i32_0 : i32, i32
  }
  func.func @transform_2(%arg0: i32) -> (i32, i32) {
    %c0_i32 = arith.constant 0 : i32
    %c0_i32_0 = arith.constant 0 : i32
    %c0_i32_1 = arith.constant 0 : i32
    return %c0_i32, %c0_i32_0 : i32, i32
  }
  func.func @transform_3(%arg0: i32) -> (i32, i32) {
    %c0_i32 = arith.constant 0 : i32
    %c0_i32_0 = arith.constant 0 : i32
    %c0_i32_1 = arith.constant 0 : i32
    return %c0_i32, %c0_i32_0 : i32, i32
  }
  func.func @transform_4(%arg0: i32) -> (i32, i32) {
    %c0_i32 = arith.constant 0 : i32
    %c0_i32_0 = arith.constant 0 : i32
    %c0_i32_1 = arith.constant 0 : i32
    return %c0_i32, %c0_i32_0 : i32, i32
  }
  func.func @transform_5(%arg0: i32) -> (i32, i32) {
    %c0_i32 = arith.constant 0 : i32
    %c0_i32_0 = arith.constant 0 : i32
    %c0_i32_1 = arith.constant 0 : i32
    return %c0_i32, %c0_i32_0 : i32, i32
  }
  func.func @transform_6(%arg0: i32) -> i32 {
    %c0_i32 = arith.constant 0 : i32
    %c0_i32_0 = arith.constant 0 : i32
    return %c0_i32 : i32
  }
  func.func @transform_7(%arg0: i32) -> (i32, i32, i32) {
    %c0_i32 = arith.constant 0 : i32
    %c0_i32_0 = arith.constant 0 : i32
    %c0_i32_1 = arith.constant 0 : i32
    return %arg0, %c0_i32, %c0_i32_0 : i32, i32, i32
  }
}

</mosaic_0001>

<bundles_post_ra>
// kernel: tpu_custom_call.1
= control target key start
LH: loop header
LB: loop body
LE: loop exit
PB: predicated region body
PF: predicated region fallthrough
CT: control target
= control target key end

     0   :  { %s1044_s0 = inlined_call_operand.hbm [shape: f32[2,4,256], index: 0, kind: input, shape index: {}]   ;;  %s1045_s1 = inlined_call_operand.vmem [shape: f32[2,4], index: 1, kind: input, shape index: {}]   ;;  %s1046_s2 = inlined_call_operand.vmem [shape: f32[1,2], index: 2, kind: input, shape index: {}]   ;;  %s1047_s3 = inlined_call_operand.vmem [shape: f32[4,2], index: 3, kind: input, shape index: {}]   ;;  %s1048_s4 = inlined_call_operand.vmem [shape: f32[1,4], index: 4, kind: input, shape index: {}]   ;;  %s1049_s5 = inlined_call_operand.vmem [shape: f32[4,1], index: 5, kind: input, shape index: {}]   ;;  %s1050_s6 = inlined_call_operand.<no memory space> [shape: f32[1], index: 6, kind: input, shape index: {}]   ;;  %s1051_s7 = inlined_call_operand.hbm [shape: f32[2,4,256], index: 7, kind: output, shape index: {}]  }
   0x1   :  { %12 = sst [smem:[#allocation2]] %s1050_s6 }
   0x2   :  { %13 = vsyncpa [#allocation4], 0 }
   0x3   :  { %15 = vsyncpa [#allocation4 + $0x1], 0 }
   0x4   :  { %16 = vsyncpa [#allocation5], 0 }
   0x5   :  { %18 = vsyncpa [#allocation5 + $0x1], 0  ;;  %s842_s26 = smov 0   ;;  %s844_s27 = smov 0  }
   0x6   :  { %s846_s28 = smov 0   ;;  %s848_s29 = smov 0  }
   0x7 LB: > { %s863_s6 = sadd.s32 4294967295, %s793_s29   ;;  %s613_s30 = sadd.s32 4294967294, %s793_s29   ;;  %s793_s29 = sphi %s848_s29, %s1066_s29   ;;  %s789_s28 = sphi %s846_s28, %s1065_s28   ;;  %s785_s27 = sphi %s844_s27, %s1064_s27   ;;  %s781_s26 = sphi %s842_s26, %s1063_s26  }
   0x8   : > { %s867_s8 = sadd.s32 1, %s793_s29   ;;  %s31_s9 = sadd.s32 1, %s789_s28 }
   0x9   : > { %s28_s10 = ssub.s32 %s793_s29, %s867_s8  ;;  %p38_p0 = scmp.ne.s32.totalorder %s789_s28, %s785_s27 }
   0xa   : > { %p29_p1 = scmp.eq.s32.totalorder %s28_s10, 0  ;;  %p39_p2 = scmp.eq.s32.totalorder %s793_s29, 0 }
   0xb   : > { %p44_p3 = scmp.ne.s32.totalorder %s785_s27, %s781_s26  ;;  %p45_p4 = scmp.eq.s32.totalorder %s863_s6, 0 }
   0xc   : > { %s879_s11 = scalar_select %p29_p1, %s789_s28, %s31_s9  }
   0xd   : > { %p881_p5 = por %p39_p2, %p38_p0  ;;  %p885_p6 = por %p45_p4, %p44_p3 }
   0xe   : > { %p194_p7 = scmp.eq.s32.totalorder %s863_s6, 1  ;;  %p200_p8 = scmp.eq.s32.totalorder %s613_s30, 1 }
   0xf   : > { %p646_p10 = scmp.lt.s32.totalorder %s793_s29, 2  ;;  %s238_s16 = sand.u32 1, %s789_s28  }
  0x10   : > { %p892_p11 = por %p194_p7, %p38_p0  ;;  %p896_p12 = por %p200_p8, %p44_p3 }
  0x11   : > { %s632_s17 = sshll.u32 %s793_s29, 7  ;;  %s616_s18 = sshll.u32 %s238_s16, 3 }
  0x12   : > { %s1055_s14 = scalar_select %p892_p11, 1, 0 }
  0x13   : > { %s1056_s15 = scalar_select %p896_p12, 1, 0 }
  0x14   : > { %s905_s21 = scalar_lea.hbm %s1044_s0, %s632_s17  ;;  %s242_s22 = scalar_lea.vmem [#allocation3], %s616_s18 }
  0x15   : > { %s250_s23 = sshll.u32 %s242_s22, 4  ;;  %p909_p13 = pnand %p646_p10, %p881_p5  ;;  %s913_s23 = int_to_ptr.vmem [resolvable:$true] %s250_s23 }
  0x16   : > { %s239_s25 = scalar_lea.sflag [#allocation4], %s238_s16  ;;  %s697_s30 = scalar_lea.hbm %s905_s21, 128 }
  0x17   : > { %p698_p2 = scmp.ne.s32.totalorder %s905_s21, %s697_s30  ;;  %p699_p3 = pneg %p909_p13 }
  0x18   : > { %s702_s12 = scalar_lea.hbm %s1044_s0, 256  ;;  %p703_p5 = scmp.lt.u32.totalorder %s905_s21, %s1044_s0 }
  0x19   : > { %p700_p4 = pnand %p699_p3, %p698_p2  ;;  %p704_p8 = scmp.lt.u32.totalorder %s702_s12, %s697_s30 }
  0x1a   : > { %p706_p9 = scmp.lt.u32.totalorder %s697_s30, %s905_s21 }
  0x1b   : > { %p701_p7 = pneg %p700_p4  ;;  %p705_p10 = por %p704_p8, %p703_p5 }
  0x1d   : > { %p707_p0 = por %p706_p9, %p705_p10 }
  0x1f   : > { %p708_p1 = pnand %p707_p0, %p701_p7 }
  0x21   : > { %711 = shalt.err (!%p708_p1)
}
  0x22   : > { %s712_s16 = scalar_lea.vmem %s913_s23, 128  ;;  %s795_s19 = smov [#allocation3]  }
  0x23   : > { %p713_p2 = scmp.ne.s32.totalorder %s913_s23, %s712_s16  ;;  %s717_s20 = sshll.u32 %s795_s19, 4  ;;  %s718_s20 = int_to_ptr.vmem [resolvable:$false] %s717_s20 }
  0x24   : > { %s719_s22 = scalar_lea.vmem %s718_s20, 256  ;;  %p720_p11 = scmp.lt.s32.totalorder %s913_s23, %s718_s20 }
  0x25   : > { %p715_p4 = pnand %p713_p2, %p699_p3  ;;  %p721_p5 = scmp.lt.s32.totalorder %s719_s22, %s712_s16 }
  0x27   : > { %p716_p12 = pneg %p715_p4  ;;  %p722_p8 = por %p721_p5, %p720_p11 }
  0x29   : > { %p723_p9 = pnand %p722_p8, %p716_p12 }
  0x2b   : > { %726 = shalt.err (!%p723_p9)
}
  0x2c   : > { %641 = dma.hbm_to_vmem [thread:$0]  (!%p909_p13), %s905_s21, 128, %s913_s23, %s239_s25  }
  0x2d   : > { %p1058_p0 = scmp.lt.s32.totalorder %s793_s29, 3  ;;  %p1059_p1 = scmp.ge.s32.totalorder %s793_s29, 1 }
  0x2f   : > { %p256_p3 = pnand %p1059_p1, %p1058_p0 }
  0x30   : > { %s947_s30 = sand.u32 (!%p256_p3), 1, %s785_s27  }
  0x31   : > { %259 = sbr.rel (%p256_p3) target bundleno = 953 (0x3b9), region = 48  ;;  %s620_s9 = sshll.u32 (!%p256_p3), %s947_s30, 3 }
  0x32   : > { %s262_s10 = scalar_lea.sflag (!%p256_p3), [#allocation4], %s947_s30  ;;  %s265_s24 = scalar_lea.vmem (!%p256_p3), [#allocation3], %s620_s9 }
  0x38   : > { %772 = dma.done.wait (%p885_p6), %s262_s10, 128  }
  0x39   : > { %774 = vsyncadd (%p885_p6), %s262_s10, 4294967168  ;;  %v309_v0 = vlaneseq  ;;  %vm300_vm0 = vcmask 1043456   ;;  %v960_v3 = vld [vmem:[%s265_s24] sm:$0xff]  ;;  %v796_v12 = vmov 0   ;;  %vm345_vm1 = vcmask 1041409   ;;  %s505_s22 = sld [smem:[#allocation2]] }
  0x3a   : > { %v307_v4 = vld [vmem:[%s1045_s1] sm:$0x3]  ;;  %v298_v5 = vcombine.high %v960_v3, %v960_v3  ;;  %v301_v6 = vsel %vm300_vm0, %v960_v3, 0.0  ;;  %682 = vset.pattern.permute.xlu1 %v796_v12  ;;  %683 = vset.pattern.permute.xlu0 %v796_v12  ;;  %vm348_vm2 = vcmask 25600   ;;  %vm435_vm3 = vcmask 1042434   ;;  %s633_s10 = sshll.u32 %s863_s6, 7 }
  0x3b   : > { %v957_v1 = vshrl.u32 %v309_v0, 7  ;;  %v622_v19 = vld [vmem:[%s1046_s2] ss:$0 sm:$0xff]  ;;  %v336_v27 = vand.u32 127, %v309_v0  ;;  %vm437_vm4 = vcmask 1043459   ;;  %vm440_vm5 = vcmask 11264   ;;  %s1000_s25 = scalar_lea.hbm %s1051_s7, %s633_s10 }
  0x3c   : > { %v302_v8 = vsel %vm300_vm0, %v298_v5, 0.0  ;;  %v364_v20 = vld [vmem:[%s1047_s3] sm:$0xf]  ;;  %s295_s24 = scalar_lea.vmem [#allocation6], %s620_s9  ;;  %s529_s6 = scalar_lea.sflag [#allocation5], %s947_s30 }
  0x3d   : > { %v318_v2 = vsub.s32 1, %v957_v1  ;;  %v303_v9 = vadd.f32 %v302_v8, %v301_v6  ;;  %v311_v10 = vsub.s32 0, %v957_v1  ;;  %v382_v23 = vsub.s32 2, %v957_v1  ;;  %v623_v44 = vld [vmem:[%s1048_s4] ss:$0 sm:$0xff]  ;;  %s543_s21 = sshll.u32 %s295_s24, 4  ;;  %s1002_s21 = int_to_ptr.vmem [resolvable:$true] %s543_s21 }
  0x3e   : > { %v389_v25 = vsub.s32 3, %v957_v1  ;;  %v339_v29 = vsub.s32 %v336_v27, %v957_v1  ;;  %v474_v47 = vld [vmem:[%s1049_s5] sm:$0xf]  ;;  %v797_v6 = vmov 839922192   ;;  %s727_s12 = scalar_lea.vmem %s1002_s21, 128 }
  0x3f   : > { %v319_v7 = vrot.slane %v307_v4, %v318_v2  ;;  %304 = vadd.xlane.f32.xlu0 %v303_v9  ;;  %v312_v11 = vrot.slane %v307_v4, %v311_v10  ;;  %v369_v21 = vrot.slane %v364_v20, %v311_v10  ;;  %v376_v22 = vrot.slane %v364_v20, %v318_v2  ;;  %p728_p6 = scmp.ne.s32.totalorder %s1002_s21, %s727_s12  ;;  %p1060_p11 = scmp.ne.s32.totalorder %s1055_s14, 0 }
  0x40   : > { %v383_v24 = vrot.slane %v364_v20, %v382_v23  ;;  %v390_v26 = vrot.slane %v364_v20, %v389_v25  ;;  %v506_v27 = vstv %s505_s22  ;;  %s798_s9 = smov [#allocation6]  }
  0x41   : > { %321 = vbcast.lane.b32.xlu1 %v319_v7, 256  ;;  %v466_v7 = vunpack.c.l.s4 %v797_v6  ;;  %p729_p12 = pnand %p728_p6, %p1060_p11  ;;  %s731_s17 = sshll.u32 %s798_s9, 4  ;;  %s732_s17 = int_to_ptr.vmem [resolvable:$false] %s731_s17 }
  0x42   : > { %s733_s18 = scalar_lea.vmem %s732_s17, 256  ;;  %p734_p7 = scmp.lt.s32.totalorder %s1002_s21, %s732_s17 }
  0x43   : > { %v467_v8 = vunpack.c.0.s8 %v466_v7  ;;  %p730_p13 = pneg %p729_p12  ;;  %p735_p10 = scmp.lt.s32.totalorder %s733_s18, %s727_s12 }
  0x45   : > { %v470_v9 = vsub.s32 %v467_v8, %v957_v1  ;;  %p736_p2 = por %p735_p10, %p734_p7 }
  0x47   : > { %p737_p4 = pnand %p736_p2, %p730_p13 }
  0x55   : > { %314 = vbcast.lane.b32.xlu0 %v312_v11, 256 }
  0x59   : > { %359 = vbcast.lane.b32.xlu0 %v622_v19, 256 }
  0x5d   : > { %371 = vbcast.lane.b32.xlu0 %v369_v21, 256 }
  0x61   : > { %378 = vbcast.lane.b32.xlu0 %v376_v22, 256 }
  0x65   : > { %385 = vbcast.lane.b32.xlu0 %v383_v24, 256 }
  0x69   : > { %392 = vbcast.lane.b32.xlu0 %v390_v26, 256 }
  0xb3   : > { %v322_v17 = vpop.permute.xlu1 %321 }
  0xcc   : > { %v305_v13 = vpop.xlane.xlu0 %304 }
  0xcd   : > { %v306_v14 = vmul.f32 0.00390625, %v305_v13 }
  0xcf   : > { %v326_v18 = vmul.f32 %v322_v17, %v306_v14 }
  0xd0   : > { %v315_v15 = vpop.permute.xlu0 %314 }
  0xd1   : > { %v325_v16 = vmul.f32 %v315_v15, %v306_v14 }
  0xd3   : > { %330 = vperm.xlu1 %682, %v325_v16  }
  0xd4   : > { %v360_v35 = vpop.permute.xlu0 %359 }
  0xd7   : > { %333 = vperm.xlu1 %682, %v326_v18  }
  0xd8   : > { %v372_v36 = vpop.permute.xlu0 %371 }
  0xdc   : > { %v379_v37 = vpop.permute.xlu0 %378 }
  0xe0   : > { %v386_v41 = vpop.permute.xlu0 %385 }
  0xe4   : > { %v393_v46 = vpop.permute.xlu0 %392 }
 0x152   : > { %v331_v28 = vpop.permute.xlu1 %330 }
 0x153   : > { %v340_v31 = vrot.slane %v331_v28, %v339_v29 }
 0x156   : > { %v334_v30 = vpop.permute.xlu1 %333 }
 0x157   : > { %v344_v32 = vrot.slane %v334_v30, %v339_v29 }
 0x159   : > { %v346_v33 = vsel %vm345_vm1, %v344_v32, %v340_v31 }
 0x15a   : > { %v349_v34 = vsel %vm348_vm2, %v346_v33, 0.0 }
 0x15b   : > { %350 = vadd.xlane.f32.xlu1 %v349_v34 }
 0x1e8   : > { %v351_v38 = vpop.xlane.xlu1 %350 }
 0x1e9   : > { %v362_v39 = vadd.f32 %v360_v35, %v351_v38 }
 0x1eb   : > { %v363_v40 = vmax.f32 %v362_v39, 0.0 }
 0x1ed   : > { %v398_v42 = vmul.f32 %v372_v36, %v363_v40  ;;  %v399_v43 = vmul.f32 %v379_v37, %v363_v40  ;;  %v400_v45 = vmul.f32 %v386_v41, %v363_v40  ;;  %v401_v48 = vmul.f32 %v393_v46, %v363_v40 }
 0x1ef   : > { %407 = vperm.xlu0 %683, %v398_v42   ;;  %410 = vperm.xlu1 %682, %v399_v43  }
 0x1f3   : > { %451 = vbcast.lane.b32.xlu1 %v623_v44, 256  ;;  %413 = vperm.xlu0 %683, %v400_v45  }
 0x1f7   : > { %477 = vperm.xlu1 %682, %v474_v47   ;;  %416 = vperm.xlu0 %683, %v401_v48  }
 0x26e   : > { %v408_v49 = vpop.permute.xlu0 %407  ;;  %v411_v50 = vpop.permute.xlu1 %410 }
 0x26f   : > { %v425_v52 = vrot.slane %v411_v50, %v339_v29  ;;  %v421_v53 = vrot.slane %v408_v49, %v339_v29 }
 0x271   : > { %v434_v56 = vsel %vm345_vm1, %v425_v52, %v421_v53 }
 0x272   : > { %v414_v51 = vpop.permute.xlu0 %413  ;;  %v452_v61 = vpop.permute.xlu1 %451 }
 0x273   : > { %v429_v54 = vrot.slane %v414_v51, %v339_v29 }
 0x275   : > { %v436_v58 = vsel %vm435_vm3, %v429_v54, %v434_v56 }
 0x276   : > { %v417_v55 = vpop.permute.xlu0 %416  ;;  %v478_v10 = vpop.permute.xlu1 %477 }
 0x277   : > { %v433_v57 = vrot.slane %v417_v55, %v339_v29  ;;  %v485_v11 = vrot.slane %v478_v10, %v470_v9 }
 0x279   : > { %v438_v59 = vsel %vm437_vm4, %v433_v57, %v436_v58  ;;  %v487_v12 = vmul.f32 %v485_v11, %v960_v3 }
 0x27a   : > { %v441_v60 = vsel %vm440_vm5, %v438_v59, 0.0 }
 0x27b   : > { %442 = vadd.xlane.f32.xlu0 %v441_v60  ;;  %v489_v13 = vcombine.high %v487_v12, %v487_v12  ;;  %v491_v15 = vsel %vm300_vm0, %v487_v12, 0.0 }
 0x27c   : > { %v492_v17 = vrot.slane %v491_v15, 4 }
 0x27d   : > { %v498_v14 = vsel %vm300_vm0, %v489_v13, 0.0 }
 0x27e   : > { %v499_v16 = vrot.slane %v498_v14, 4  ;;  %v493_v19 = vadd.f32 %v492_v17, %v491_v15 }
 0x280   : > { %v500_v18 = vadd.f32 %v499_v16, %v498_v14  ;;  %v494_v21 = vrot.slane %v493_v19, 2 }
 0x282   : > { %v501_v20 = vrot.slane %v500_v18, 2  ;;  %v495_v23 = vadd.f32 %v494_v21, %v493_v19 }
 0x284   : > { %v502_v22 = vadd.f32 %v501_v20, %v500_v18  ;;  %v496_v1 = vrot.slane %v495_v23, 1 }
 0x286   : > { %v503_v24 = vrot.slane %v502_v22, 1  ;;  %v497_v26 = vadd.f32 %v496_v1, %v495_v23 }
 0x288   : > { %v504_v25 = vadd.f32 %v503_v24, %v502_v22  ;;  %v507_v29 = vadd.f32 %v506_v27, %v497_v26 }
 0x28a   : > { %v508_v28 = vadd.f32 %v506_v27, %v504_v25  ;;  %v625_v31 = vmul.f32 -1.442695, %v507_v29 }
 0x28c   : > { %v626_v30 = vmul.f32 -1.442695, %v508_v28 }
 0x308   : > { %v443_v62 = vpop.xlane.xlu0 %442 }
 0x309   : > { %v454_v63 = vadd.f32 %v452_v61, %v443_v62 }
 0x30b   : > { %v624_v0 = vmul.f32 -1.442695, %v454_v63 }
 0x30d   : > { %685 = vpow2.f32 %v624_v0 }
 0x317   : > { %v686_v2 = vpop.eup %685 }
 0x318   : > { %v458_v4 = vadd.f32 1.0, %v686_v2 }
 0x31a   : > { %687 = vrcp.f32 %v458_v4 }
 0x31b   : > { %689 = vpow2.f32 %v626_v30 }
 0x31c   : > { %691 = vpow2.f32 %v625_v31 }
 0x324   : > { %v688_v5 = vpop.eup %687 }
 0x325   : > { %463 = vperm.xlu1 %682, %v688_v5   ;;  %v690_v32 = vpop.eup %689 }
 0x326   : > { %v692_v33 = vpop.eup %691  ;;  %v516_v34 = vadd.f32 1.0, %v690_v32 }
 0x327   : > { %v515_v35 = vadd.f32 1.0, %v692_v33 }
 0x328   : > { %693 = vrcp.f32 %v516_v34 }
 0x329   : > { %695 = vrcp.f32 %v515_v35 }
 0x332   : > { %v694_v36 = vpop.eup %693 }
 0x333   : > { %v696_v37 = vpop.eup %695 }
 0x334   : > { %v523_v38 = vcombine.low %v696_v37, %v694_v36 }
 0x336   : > { %v525_v41 = vmul.f32 %v523_v38, %v960_v3 }
 0x3a4   : > { %v464_v39 = vpop.permute.xlu1 %463 }
 0x3a5   : > { %v471_v40 = vrot.slane %v464_v39, %v470_v9 }
 0x3a7   : > { %v473_v42 = vmul.f32 %v471_v40, %v960_v3 }
 0x3a9   : > { %v526_v43 = vmax.f32 %v473_v42, %v525_v41 }
 0x3ab   : > { %527 = vst [vmem:[%s295_s24] sm:$0xff] %v526_v43 }
 0x3ac   : > { %740 = shalt.err (!%p737_p4)
}
 0x3ad   : > { %s741_s30 = scalar_lea.hbm %s1000_s25, 128  ;;  %s745_s20 = scalar_lea.hbm %s1051_s7, 256 }
 0x3ae   : > { %p742_p5 = scmp.ne.s32.totalorder %s1000_s25, %s741_s30  ;;  %p746_p0 = scmp.lt.u32.totalorder %s1000_s25, %s1051_s7 }
 0x3af   : > { %p747_p1 = scmp.lt.u32.totalorder %s745_s20, %s741_s30  ;;  %p749_p6 = scmp.lt.u32.totalorder %s741_s30, %s1000_s25 }
 0x3b0   : > { %p743_p8 = pnand %p742_p5, %p1060_p11 }
 0x3b1   : > { %p748_p3 = por %p747_p1, %p746_p0 }
 0x3b2   : > { %p744_p9 = pneg %p743_p8 }
 0x3b3   : > { %p750_p12 = por %p749_p6, %p748_p3 }
 0x3b5   : > { %p751_p13 = pnand %p750_p12, %p744_p9 }
 0x3b7   : > { %754 = shalt.err (!%p751_p13)
}
 0x3b8   : > { %636 = dma.vmem_to_hbm [thread:$0]  (%p1060_p11), %s1002_s21, 128, %s1000_s25, %s529_s6  }
 0x3b9 PF: > { %s555_s24 = sand.u32 1, %s781_s26   ;;  %p1061_p7 = scmp.ne.s32.totalorder %s1056_s15, 0 }
 0x3ba   : > { %p1062_p10 = scmp.ge.s32.totalorder %s793_s29, 2  ;;  %s556_s23 = scalar_lea.sflag [#allocation5], %s555_s24 }
 0x3bc   : > { %p643_p2 = pnand %p1062_p10, %p1061_p7 }
 0x3be   : > { %776 = dma.done.wait (!%p643_p2), %s556_s23, 128  }
 0x3bf   : > { %778 = vsyncadd (!%p643_p2), %s556_s23, 4294967168  ;;  %p21_p4 = scmp.ge.s32.totalorder %s867_s8, 4   ;;  %s1063_s26 = smov %s785_s27 }
 0x3c0   : > { %s1064_s27 = smov %s789_s28  ;;  %s1065_s28 = smov %s879_s11 }
 0x3c1   : > { %s1066_s29 = smov %s867_s8  ;;  %23 = sbr.rel (!%p21_p4) target bundleno = 7 (0x7), region = 93 }
 0x3c8   :  { %561 = vsyncpa [#allocation4], 1 }
 0x3c9   :  { %563 = vsyncpa [#allocation4 + $0x1], 1 }
 0x3ca   :  { %564 = vsyncpa [#allocation5], 1 }
 0x3cb   :  { %566 = vsyncpa [#allocation5 + $0x1], 1 }

</bundles_post_ra>
